<compile_context>
chip_gen: v7x
topology: tpu7x:2x2x1
jax: 0.10.0
libtpu: 0.0.40
codegen_flags: <defaults>
</compile_context>

<pallas_src>
import functools

import numpy as np
import jax
import jax.numpy as jnp
from jax.experimental import pallas as pl
from jax.experimental.pallas import tpu as pltpu

HIDDEN = 768
N_HEADS = 16
TASKS = (("ocnli", 3), ("ocemotion", 7), ("tnews", 15))
SLAB_WIDTH = 512          # 16 + 16*(3+7+15) = 416 value/logit cols, pad to 4*128
OUT_WIDTH = 128           # lane-dense output slab width
ROW_ALIGN = 16            # bf16 sublane packing -> keep row tiles multiples of 16


def _round_up(x, m):
    return ((x + m - 1) // m) * m


# ---------------------------------------------------------------------------
# Kernel: one row-tile of the fused multi-task head
# ---------------------------------------------------------------------------
def _fused_heads_kernel(cls_ref, w_ref, b_ref, e_ref, s_ref, out_ref):
    # cls_ref : (TILE_N, 768) bf16  gathered + concatenated cls embeddings
    # w_ref   : (768, 512)   bf16  [atten_w | ocnli_w | ocemotion_w | tnews_w | 0]
    # b_ref   : (1, 512)     f32   matching biases (pad cols are 0)
    # e_ref   : (16, 512)    bf16  0/1 head -> value-column expansion matrix
    # s_ref   : (512, 128)   bf16  0/1 value-column -> output-class reduction
    # out_ref : (TILE_N, 128) f32  lane-dense output slab

    # Single combined native-bf16 MXU pass (f32 accumulate): attention logits
    # plus all three value projections.
    res = jnp.dot(cls_ref[...], w_ref[...], preferred_element_type=jnp.float32)
    res = res + b_ref[...]

    # Softmax over the 16 heads (dim=1 in the torch code). Dropout(0.2) is
    # identity at inference. The divide goes to the EUP slot (approx recip).
    logits = res[:, :N_HEADS]
    logits = logits - jnp.max(logits, axis=1, keepdims=True)
    ex = jnp.exp(logits)
    inv = pl.reciprocal(jnp.sum(ex, axis=1, keepdims=True), approx=True)
    probs = ex * inv                                                  # (n, 16) f32

    # probs_exp[n, col] = probs[n, head(col)] for every value column and 0 for
    # the logit / pad columns — a tiny MXU matmul against the constant 0/1
    # expansion matrix (no unaligned lane repeats on the VPU).
    probs_exp = jnp.dot(probs.astype(jnp.bfloat16), e_ref[...],
                        preferred_element_type=jnp.float32)

    # weighted[n, col] = probs[n, head(col)] * value[n, col]; the second 0/1
    # matmul sums the 16 head contributions of each (task, class) pair into its
    # fixed output lane -> lane-dense (TILE_N, 128) store.
    weighted = (probs_exp * res).astype(jnp.bfloat16)
    out = jnp.dot(weighted, s_ref[...], preferred_element_type=jnp.float32)
    out_ref[...] = out.astype(out_ref.dtype)


# ---------------------------------------------------------------------------
# pallas_call wrapper: tile the batch axis, pipeline, shard across cores
# ---------------------------------------------------------------------------
def _choose_tile(n, tile_n):
    """Row tile: multiple of 16, <= tile_n, and <= ceil(n/2) so batches with
    more than 16 rows always give >= 2 grid steps (keeps v7x's 2nd TC busy)."""
    tile_n = max(ROW_ALIGN, _round_up(int(tile_n), ROW_ALIGN))
    if n <= ROW_ALIGN:
        return ROW_ALIGN
    half = _round_up(-(-n // 2), ROW_ALIGN)
    return min(tile_n, half)


def _const_block_spec(shape, index_map):
    """Grid-invariant operand: single-buffer it (Pallas only DMAs it once since
    the block index never changes; double-buffering would just waste VMEM)."""
    try:
        return pl.BlockSpec(shape, index_map, pipeline_mode=pl.Buffered(1))
    except Exception:  # older jax without pipeline_mode / Buffered
        return pl.BlockSpec(shape, index_map)


def fused_task_heads(cls_all, w_comb, b_comb, e_mat, s_mat, *, tile_n=1024):
    n = cls_all.shape[0]
    cls_all = cls_all.astype(jnp.bfloat16)

    tile = _choose_tile(n, tile_n)
    n_pad = _round_up(n, tile)
    if n_pad != n:
        cls_all = jnp.pad(cls_all, ((0, n_pad - n), (0, 0)))
    grid = (n_pad // tile,)

    cost = pl.CostEstimate(
        flops=2 * n_pad * (HIDDEN * SLAB_WIDTH
                           + N_HEADS * SLAB_WIDTH
                           + SLAB_WIDTH * OUT_WIDTH),
        transcendentals=n_pad * N_HEADS,
        bytes_accessed=(n_pad * HIDDEN * 2 + n_pad * OUT_WIDTH * 4
                        + HIDDEN * SLAB_WIDTH * 2 + SLAB_WIDTH * 4
                        + N_HEADS * SLAB_WIDTH * 2 + SLAB_WIDTH * OUT_WIDTH * 2),
    )

    out = pl.pallas_call(
        _fused_heads_kernel,
        out_shape=jax.ShapeDtypeStruct((n_pad, OUT_WIDTH), jnp.float32),
        grid=grid,
        in_specs=[
            pl.BlockSpec((tile, HIDDEN), lambda i: (i, 0)),                 # cls tile
            _const_block_spec((HIDDEN, SLAB_WIDTH), lambda i: (0, 0)),      # W_comb
            _const_block_spec((1, SLAB_WIDTH), lambda i: (0, 0)),           # b_comb
            _const_block_spec((N_HEADS, SLAB_WIDTH), lambda i: (0, 0)),     # E
            _const_block_spec((SLAB_WIDTH, OUT_WIDTH), lambda i: (0, 0)),   # S
        ],
        out_specs=pl.BlockSpec((tile, OUT_WIDTH), lambda i: (i, 0)),
        compiler_params=pltpu.CompilerParams(
            dimension_semantics=("parallel",),     # shards across v7x's 2 TCs
            vmem_limit_bytes=32 * 1024 * 1024,     # explicit budget (v5e default
        ),                                         # is 16 MiB scoped; v7x 64 MiB phys)
        cost_estimate=cost,
    )(cls_all, w_comb, b_comb, e_mat, s_mat)
    return out[:n]


# ---------------------------------------------------------------------------
# Parameter packing (done once, reused for every forward pass)
# ---------------------------------------------------------------------------
def init_params(key):
    ks = jax.random.split(key, 8)
    scale = 0.02
    return {
        "atten_w": scale * jax.random.normal(ks[0], (HIDDEN, N_HEADS), jnp.float32),
        "atten_b": scale * jax.random.normal(ks[1], (1, N_HEADS), jnp.float32),
        "ocnli_w": scale * jax.random.normal(ks[2], (HIDDEN, N_HEADS * 3), jnp.float32),
        "ocnli_b": scale * jax.random.normal(ks[3], (1, N_HEADS * 3), jnp.float32),
        "ocemotion_w": scale * jax.random.normal(ks[4], (HIDDEN, N_HEADS * 7), jnp.float32),
        "ocemotion_b": scale * jax.random.normal(ks[5], (1, N_HEADS * 7), jnp.float32),
        "tnews_w": scale * jax.random.normal(ks[6], (HIDDEN, N_HEADS * 15), jnp.float32),
        "tnews_b": scale * jax.random.normal(ks[7], (1, N_HEADS * 15), jnp.float32),
    }


def prepare_fused_params(params):
    """Pack the four Linear layers into one lane-dense bf16 weight slab and build
    the constant 0/1 expansion (E) and reduction (S) matrices (exact in bf16)."""
    w = np.zeros((HIDDEN, SLAB_WIDTH), np.float32)
    b = np.zeros((1, SLAB_WIDTH), np.float32)
    e = np.zeros((N_HEADS, SLAB_WIDTH), np.float32)
    s = np.zeros((SLAB_WIDTH, OUT_WIDTH), np.float32)

    w[:, :N_HEADS] = np.asarray(params["atten_w"])
    b[:, :N_HEADS] = np.asarray(params["atten_b"])

    col = N_HEADS
    out_lane = 0
    for name, C in TASKS:
        w[:, col:col + N_HEADS * C] = np.asarray(params[name + "_w"])
        b[:, col:col + N_HEADS * C] = np.asarray(params[name + "_b"])
        for k in range(N_HEADS):
            for c in range(C):
                e[k, col + k * C + c] = 1.0               # head k -> its value cols
                s[col + k * C + c, out_lane + c] = 1.0    # value col -> output lane
        col += N_HEADS * C
        out_lane += C

    return {"w_comb": jnp.asarray(w, jnp.bfloat16),
            "b_comb": jnp.asarray(b, jnp.float32),
            "e_mat": jnp.asarray(e, jnp.bfloat16),
            "s_mat": jnp.asarray(s, jnp.bfloat16)}


# ---------------------------------------------------------------------------
# Forward pass matching Net.forward (three possibly-empty id sets)
# ---------------------------------------------------------------------------
def net_forward(fused, bert_seq_out, ocnli_ids, ocemotion_ids, tnews_ids,
                *, tile_n=1024):
    # bert_seq_out: [batch, seq, 768] -- stand-in for self.bert(...)[0]
    # bf16 cast BEFORE the gather halves the intermediate cls_all HBM traffic.
    cls_emb = bert_seq_out[:, 0, :].astype(jnp.bfloat16)             # [batch, 768]
    id_lists = (ocnli_ids, ocemotion_ids, tnews_ids)
    counts = [int(ids.shape[0]) for ids in id_lists]

    # Gather + concat the per-task cls rows (plain-JAX glue, cheap vs. the head).
    segs = [jnp.take(cls_emb, ids, axis=0)
            for ids, n in zip(id_lists, counts) if n > 0]
    if not segs:
        return (None, None, None)
    cls_all = segs[0] if len(segs) == 1 else jnp.concatenate(segs, axis=0)

    slab = fused_task_heads(cls_all, fused["w_comb"], fused["b_comb"],
                            fused["e_mat"], fused["s_mat"], tile_n=tile_n)

    outs, row, lane = [], 0, 0
    for n_t, (_, C) in zip(counts, TASKS):
        if n_t == 0:
            outs.append(None)
        else:
            outs.append(slab[row:row + n_t, lane:lane + C])
            row += n_t
        lane += C
    return tuple(outs)


# ---------------------------------------------------------------------------
# Plain-JAX f32 reference (mirrors the torch module)
# ---------------------------------------------------------------------------
def _reference(params, cls_emb, ids, w_name, b_name, C):
    cls = cls_emb[ids]
    sm = jax.nn.softmax(cls @ params["atten_w"] + params["atten_b"], axis=1)
    v = (cls @ params[w_name] + params[b_name]).reshape(-1, N_HEADS, C)
    return jnp.einsum("nk,nkc->nc", sm, v)


def _check(params, bert_seq_out, ids_tuple, outs):
    cls_emb = bert_seq_out[:, 0, :]
    refs = (
        _reference(params, cls_emb, ids_tuple[0], "ocnli_w", "ocnli_b", 3),
        _reference(params, cls_emb, ids_tuple[1], "ocemotion_w", "ocemotion_b", 7),
        _reference(params, cls_emb, ids_tuple[2], "tnews_w", "tnews_b", 15),
    )
    for o, r in zip(outs, refs):
        assert o.shape == r.shape
        # 2e-2 tolerance: kernel runs the 768-deep contraction with bf16 inputs
        # (f32 accumulate) + approx reciprocal, while the f32 reference itself
        # uses the MXU's default reduced-precision path.
        err = float(jnp.max(jnp.abs(o.astype(jnp.float32) - r)))
        assert err < 2e-2, f"max abs err {err}"


if __name__ == "__main__":
    key = jax.random.PRNGKey(0)
    k_params, k_bert, k_bert2 = jax.random.split(key, 3)

    params = init_params(k_params)
    fused = prepare_fused_params(params)

    # ---- small primary test ------------------------------------------------
    batch, seq = 6, 8
    bert_seq_out = jax.random.normal(k_bert, (batch, seq, HIDDEN), jnp.float32)
    ocnli_ids = jnp.array([0, 1], dtype=jnp.int32)
    ocemotion_ids = jnp.array([2, 3], dtype=jnp.int32)
    tnews_ids = jnp.array([4, 5], dtype=jnp.int32)

    fwd = jax.jit(functools.partial(net_forward, tile_n=1024))
    outs = fwd(fused, bert_seq_out, ocnli_ids, ocemotion_ids, tnews_ids)
    outs = jax.block_until_ready(outs)
    _check(params, bert_seq_out, (ocnli_ids, ocemotion_ids, tnews_ids), outs)

    # ---- second test: exercises multi-tile grid + row padding --------------
    batch2, seq2 = 40, 4
    bert_seq_out2 = jax.random.normal(k_bert2, (batch2, seq2, HIDDEN), jnp.float32)
    ids_a = jnp.arange(0, 13, dtype=jnp.int32)
    ids_b = jnp.arange(13, 27, dtype=jnp.int32)
    ids_c = jnp.arange(27, 40, dtype=jnp.int32)
    outs2 = net_forward(fused, bert_seq_out2, ids_a, ids_b, ids_c, tile_n=16)
    outs2 = jax.block_until_ready(outs2)
    _check(params, bert_seq_out2, (ids_a, ids_b, ids_c), outs2)

    print("KERNEL_OK")
</pallas_src>

<mosaic_0001>
module attributes {stable_mosaic.version = 11 : i64} {
  func.func @_fused_heads_kernel(%arg0: i32, %arg1: memref<16x768xbf16, #tpu.memory_space<vmem>>, %arg2: memref<768x512xbf16, #tpu.memory_space<vmem>>, %arg3: memref<1x512xf32, #tpu.memory_space<vmem>>, %arg4: memref<16x512xbf16, #tpu.memory_space<vmem>>, %arg5: memref<512x128xbf16, #tpu.memory_space<vmem>>, %arg6: memref<16x128xf32, #tpu.memory_space<vmem>>) attributes {dimension_semantics = [#tpu.dimension_semantics<parallel>], iteration_bounds = array<i64: 1>, scalar_prefetch = 0 : i64, scratch_operands = 0 : i64, tpu.core_type = #tpu.core_type<tc>, window_params = [{transform_indices = @transform_0, window_bounds = array<i64: 16, 768>}, {pipeline_mode = #tpu.pipeline_mode<synchronous>, transform_indices = @transform_1, window_bounds = array<i64: 768, 512>}, {pipeline_mode = #tpu.pipeline_mode<synchronous>, transform_indices = @transform_2, window_bounds = array<i64: 1, 512>}, {pipeline_mode = #tpu.pipeline_mode<synchronous>, transform_indices = @transform_3, window_bounds = array<i64: 16, 512>}, {pipeline_mode = #tpu.pipeline_mode<synchronous>, transform_indices = @transform_4, window_bounds = array<i64: 512, 128>}, {transform_indices = @transform_5, window_bounds = array<i64: 16, 128>}]} {
    %c0 = arith.constant 0 : index
    %c0_0 = arith.constant 0 : index
    %0 = vector.load %arg1[%c0, %c0_0] : memref<16x768xbf16, #tpu.memory_space<vmem>>, vector<16x768xbf16>
    %c0_1 = arith.constant 0 : index
    %c0_2 = arith.constant 0 : index
    %1 = vector.load %arg2[%c0_1, %c0_2] : memref<768x512xbf16, #tpu.memory_space<vmem>>, vector<768x512xbf16>
    %cst = arith.constant dense<0.000000e+00> : vector<16x512xf32>
    %2 = tpu.matmul %0, %1, %cst {dimension_numbers = #tpu.dot_dimension_numbers<[1], [0], [0], [1], [0, 0, 1, 1], [], []>} : vector<16x768xbf16>, vector<768x512xbf16>, vector<16x512xf32> -> vector<16x512xf32>
    %c0_3 = arith.constant 0 : index
    %c0_4 = arith.constant 0 : index
    %3 = vector.load %arg3[%c0_3, %c0_4] : memref<1x512xf32, #tpu.memory_space<vmem>>, vector<1x512xf32>
    %4 = vector.broadcast %3 : vector<1x512xf32> to vector<16x512xf32>
    %5 = arith.addf %2, %4 : vector<16x512xf32>
    %6 = vector.extract_strided_slice %5 {offsets = [0, 0], sizes = [16, 16], strides = [1, 1]} : vector<16x512xf32> to vector<16x16xf32>
    %cst_5 = arith.constant dense<0xFF800000> : vector<16xf32>
    %7 = vector.multi_reduction <maximumf>, %6, %cst_5 [1] : vector<16x16xf32> to vector<16xf32>
    %8 = vector.shape_cast %7 : vector<16xf32> to vector<16x1xf32>
    %9 = vector.broadcast %8 : vector<16x1xf32> to vector<16x16xf32>
    %10 = arith.subf %6, %9 : vector<16x16xf32>
    %11 = math.exp %10 : vector<16x16xf32>
    %cst_6 = arith.constant dense<0.000000e+00> : vector<16xf32>
    %12 = vector.multi_reduction <add>, %11, %cst_6 [1] : vector<16x16xf32> to vector<16xf32>
    %13 = vector.shape_cast %12 : vector<16xf32> to vector<16x1xf32>
    %14 = tpu.reciprocal %13 {approx = true} : vector<16x1xf32> -> vector<16x1xf32>
    %15 = vector.broadcast %14 : vector<16x1xf32> to vector<16x16xf32>
    %16 = arith.mulf %11, %15 : vector<16x16xf32>
    %17 = arith.truncf %16 : vector<16x16xf32> to vector<16x16xbf16>
    %c0_7 = arith.constant 0 : index
    %c0_8 = arith.constant 0 : index
    %18 = vector.load %arg4[%c0_7, %c0_8] : memref<16x512xbf16, #tpu.memory_space<vmem>>, vector<16x512xbf16>
    %cst_9 = arith.constant dense<0.000000e+00> : vector<16x512xf32>
    %19 = tpu.matmul %17, %18, %cst_9 {dimension_numbers = #tpu.dot_dimension_numbers<[1], [0], [0], [1], [0, 0, 1, 1], [], []>} : vector<16x16xbf16>, vector<16x512xbf16>, vector<16x512xf32> -> vector<16x512xf32>
    %20 = arith.mulf %19, %5 : vector<16x512xf32>
    %21 = arith.truncf %20 : vector<16x512xf32> to vector<16x512xbf16>
    %c0_10 = arith.constant 0 : index
    %c0_11 = arith.constant 0 : index
    %22 = vector.load %arg5[%c0_10, %c0_11] : memref<512x128xbf16, #tpu.memory_space<vmem>>, vector<512x128xbf16>
    %cst_12 = arith.constant dense<0.000000e+00> : vector<16x128xf32>
    %23 = tpu.matmul %21, %22, %cst_12 {dimension_numbers = #tpu.dot_dimension_numbers<[1], [0], [0], [1], [0, 0, 1, 1], [], []>} : vector<16x512xbf16>, vector<512x128xbf16>, vector<16x128xf32> -> vector<16x128xf32>
    %c0_13 = arith.constant 0 : index
    %c0_14 = arith.constant 0 : index
    %24 = vector.load %arg6[%c0_13, %c0_14] : memref<16x128xf32, #tpu.memory_space<vmem>>, vector<16x128xf32>
    tpu.vector_store %arg6[%c0_13, %c0_14], %23 {strides = array<i32>} : memref<16x128xf32, #tpu.memory_space<vmem>>, vector<16x128xf32>,
    return
  }
  func.func @transform_0(%arg0: i32) -> (i32, i32) {
    %c0_i32 = arith.constant 0 : i32
    %c0_i32_0 = arith.constant 0 : i32
    return %arg0, %c0_i32 : i32, i32
  }
  func.func @transform_1(%arg0: i32) -> (i32, i32) {
    %c0_i32 = arith.constant 0 : i32
    %c0_i32_0 = arith.constant 0 : i32
    %c0_i32_1 = arith.constant 0 : i32
    return %c0_i32, %c0_i32_0 : i32, i32
  }
  func.func @transform_2(%arg0: i32) -> (i32, i32) {
    %c0_i32 = arith.constant 0 : i32
    %c0_i32_0 = arith.constant 0 : i32
    %c0_i32_1 = arith.constant 0 : i32
    return %c0_i32, %c0_i32_0 : i32, i32
  }
  func.func @transform_3(%arg0: i32) -> (i32, i32) {
    %c0_i32 = arith.constant 0 : i32
    %c0_i32_0 = arith.constant 0 : i32
    %c0_i32_1 = arith.constant 0 : i32
    return %c0_i32, %c0_i32_0 : i32, i32
  }
  func.func @transform_4(%arg0: i32) -> (i32, i32) {
    %c0_i32 = arith.constant 0 : i32
    %c0_i32_0 = arith.constant 0 : i32
    %c0_i32_1 = arith.constant 0 : i32
    return %c0_i32, %c0_i32_0 : i32, i32
  }
  func.func @transform_5(%arg0: i32) -> (i32, i32) {
    %c0_i32 = arith.constant 0 : i32
    %c0_i32_0 = arith.constant 0 : i32
    return %arg0, %c0_i32 : i32, i32
  }
}

</mosaic_0001>

<bundles_post_ra>
// kernel: net_forward.1
= control target key start
LH: loop header
LB: loop body
LE: loop exit
PB: predicated region body
PF: predicated region fallthrough
CT: control target
= control target key end

     0   :  { %10 = vsyncpa [#allocation3], 0  ;;  %s2672_s18 = smov [#allocation2]   ;;  %s2919_s0 = inlined_call_operand.vmem [shape: bf16[16,768], index: 0, kind: input, shape index: {}]   ;;  %s2920_s1 = inlined_call_operand.hbm [shape: bf16[768,512], index: 1, kind: input, shape index: {}]   ;;  %s2921_s2 = inlined_call_operand.vmem [shape: f32[1,512], index: 2, kind: input, shape index: {}]   ;;  %s2922_s3 = inlined_call_operand.vmem [shape: bf16[16,512], index: 3, kind: input, shape index: {}]   ;;  %s2923_s4 = inlined_call_operand.vmem [shape: bf16[512,128], index: 4, kind: input, shape index: {}]   ;;  %s2924_s5 = inlined_call_operand.vmem [shape: f32[16,128], index: 5, kind: output, shape index: {}]  }
   0x1   :  { %s18_s19 = sshll.u32 %s2672_s18, 4  ;;  %s2648_s22 = scalar_lea.hbm %s2920_s1, 24576  ;;  %s19_s19 = int_to_ptr.vmem [resolvable:$true] %s18_s19 }
   0x2   :  { %p2649_p0 = scmp.ne.s32.totalorder %s2920_s1, %s2648_s22  ;;  %p2652_p1 = scmp.lt.u32.totalorder %s2648_s22, %s2920_s1 }
   0x4   :  { %p2654_p2 = pnand %p2652_p1, %p2649_p0 }
   0x6   :  { %2657 = shalt.err (!%p2654_p2)
}
   0x7   :  { %s2658_s27 = scalar_lea.vmem %s19_s19, 24576  ;;  %p2663_p4 = scmp.lt.s32.totalorder %s19_s19, %s19_s19 }
   0x8   :  { %p2659_p3 = scmp.ne.s32.totalorder %s19_s19, %s2658_s27  ;;  %p2664_p5 = scmp.lt.s32.totalorder %s2658_s27, %s2658_s27 }
   0xa   :  { %p2665_p6 = por %p2664_p5, %p2663_p4 }
   0xc   :  { %p2666_p7 = pnand %p2665_p6, %p2659_p3 }
   0xe   :  { %2669 = shalt.err (!%p2666_p7)
}
   0xf   :  { %s2673_s28 = smov 256   ;;  %s2674_s29 = smov 16  }
  0x10   :  { %24 = dma.hbm_to_vmem [thread:$0]  %s2920_s1, 24576, %s19_s19, [#allocation3], %s2673_s28, %s2673_s28, %s2674_s29  }
  0x11   :  { %2670 = dma.done.wait [#allocation3], 24576  }
  0x12   :  { %2671 = vsyncadd [#allocation3], 4294942720  ;;  %v2305_v0 = vld [vmem:[#allocation2 + $0x4] ss:$16 sps:$4 sm:$0xff]   ;;  %v2307_v1 = vld [vmem:[#allocation2] ss:$16 sps:$4 sm:$0xff]  }
  0x13   :  { %1245 = vmatprep.subr.bf16.mxu0 %v2305_v0  ;;  %v2308_v2 = vld [vmem:[#allocation2 + $0x24] ss:$16 sps:$4 sm:$0xff]   ;;  %v2310_v3 = vld [vmem:[#allocation2 + $0x20] ss:$16 sps:$4 sm:$0xff]   ;;  %v2458_v40 = vld [vmem:[#allocation2 + $0xc] ss:$16 sps:$4 sm:$0xff]  }
  0x14   :  { %1246 = vmatpush1.bf16.msra.mxu0 %v2307_v1  ;;  %v2311_v4 = vld [vmem:[#allocation2 + $0x44] ss:$16 sps:$4 sm:$0xff]   ;;  %v2313_v5 = vld [vmem:[#allocation2 + $0x40] ss:$16 sps:$4 sm:$0xff]   ;;  %v2460_v42 = vld [vmem:[#allocation2 + $0x8] ss:$16 sps:$4 sm:$0xff]   ;;  %1374 = vmatprep.subr.bf16.mxu1 %v2458_v40 }
  0x15   :  { %1247 = vmatprep.subr.bf16.mxu0 %v2308_v2  ;;  %v2314_v6 = vld [vmem:[#allocation2 + $0x64] ss:$16 sps:$4 sm:$0xff]   ;;  %v2316_v7 = vld [vmem:[#allocation2 + $0x60] ss:$16 sps:$4 sm:$0xff]   ;;  %v2461_v44 = vld [vmem:[#allocation2 + $0x2c] ss:$16 sps:$4 sm:$0xff]   ;;  %1375 = vmatpush1.bf16.msra.mxu1 %v2460_v42 }
  0x16   :  { %v2317_v8 = vld [vmem:[#allocation2 + $0x84] ss:$16 sps:$4 sm:$0xff]   ;;  %v2319_v9 = vld [vmem:[#allocation2 + $0x80] ss:$16 sps:$4 sm:$0xff]   ;;  %v2463_v45 = vld [vmem:[#allocation2 + $0x28] ss:$16 sps:$4 sm:$0xff]   ;;  %1376 = vmatprep.subr.bf16.mxu1 %v2461_v44 }
  0x17   :  { %v2320_v10 = vld [vmem:[#allocation2 + $0xa4] ss:$16 sps:$4 sm:$0xff]   ;;  %v2322_v11 = vld [vmem:[#allocation2 + $0xa0] ss:$16 sps:$4 sm:$0xff]   ;;  %v2464_v44 = vld [vmem:[#allocation2 + $0x4c] ss:$16 sps:$4 sm:$0xff]  }
  0x18   :  { %1248 = vmatpush1.bf16.msra.mxu0 %v2310_v3  ;;  %v2323_v12 = vld [vmem:[#allocation2 + $0xc4] ss:$16 sps:$4 sm:$0xff]   ;;  %v2325_v14 = vld [vmem:[#allocation2 + $0xc0] ss:$16 sps:$4 sm:$0xff]   ;;  %vm1503_vm0 = vcmask 130048  }
  0x19   :  { %1249 = vmatprep.subr.bf16.mxu0 %v2311_v4  ;;  %v2355_v13 = vld [vmem:[%s2919_s0 + $0x4] ss:$24 sps:$4 sm:$0xff]   ;;  %v2328_v16 = vld [vmem:[#allocation2 + $0xe0] ss:$16 sps:$4 sm:$0xff]   ;;  %1377 = vmatpush1.bf16.msra.mxu1 %v2463_v45  ;;  %v2466_v45 = vld [vmem:[#allocation2 + $0x48] ss:$16 sps:$4 sm:$0xff]  }
  0x1a   :  { %v2326_v15 = vld [vmem:[#allocation2 + $0xe4] ss:$16 sps:$4 sm:$0xff]   ;;  %1277 = vmatprep.mubr.bf16.mxu0 %v2355_v13  ;;  %1406 = vmatprep.mubr.bf16.mxu1 %v2355_v13  ;;  %v2331_v18 = vld [vmem:[#allocation2 + $0x100] ss:$16 sps:$4 sm:$0xff]  }
  0x1b   :  { %v2329_v17 = vld [vmem:[#allocation2 + $0x104] ss:$16 sps:$4 sm:$0xff]   ;;  %v2334_v20 = vld [vmem:[#allocation2 + $0x120] ss:$16 sps:$4 sm:$0xff]   ;;  %1378 = vmatprep.subr.bf16.mxu1 %v2464_v44  ;;  %v2556_v44 = vld [vmem:[#allocation2 + $0x40c] ss:$16 sps:$4 sm:$0xff]  }
  0x1c   :  { %1250 = vmatpush1.bf16.msra.mxu0 %v2313_v5  ;;  %v2332_v19 = vld [vmem:[#allocation2 + $0x124] ss:$16 sps:$4 sm:$0xff]   ;;  %v2337_v22 = vld [vmem:[#allocation2 + $0x140] ss:$16 sps:$4 sm:$0xff]  }
  0x1d   :  { %1251 = vmatprep.subr.bf16.mxu0 %v2314_v6  ;;  %v2335_v21 = vld [vmem:[#allocation2 + $0x144] ss:$16 sps:$4 sm:$0xff]   ;;  %v2340_v24 = vld [vmem:[#allocation2 + $0x160] ss:$16 sps:$4 sm:$0xff]   ;;  %1379 = vmatpush1.bf16.msra.mxu1 %v2466_v45 }
  0x1e   :  { %v2338_v23 = vld [vmem:[#allocation2 + $0x164] ss:$16 sps:$4 sm:$0xff]   ;;  %v2343_v26 = vld [vmem:[#allocation2 + $0x180] ss:$16 sps:$4 sm:$0xff]  }
  0x1f   :  { %v2341_v25 = vld [vmem:[#allocation2 + $0x184] ss:$16 sps:$4 sm:$0xff]   ;;  %v2346_v28 = vld [vmem:[#allocation2 + $0x1a0] ss:$16 sps:$4 sm:$0xff]  }
  0x20   :  { %1252 = vmatpush1.bf16.msra.mxu0 %v2316_v7  ;;  %v2344_v27 = vld [vmem:[#allocation2 + $0x1a4] ss:$16 sps:$4 sm:$0xff]   ;;  %v2349_v30 = vld [vmem:[#allocation2 + $0x1c0] ss:$16 sps:$4 sm:$0xff]  }
  0x21   :  { %1253 = vmatprep.subr.bf16.mxu0 %v2317_v8  ;;  %v2347_v29 = vld [vmem:[#allocation2 + $0x1c4] ss:$16 sps:$4 sm:$0xff]   ;;  %v2352_v32 = vld [vmem:[#allocation2 + $0x1e0] ss:$16 sps:$4 sm:$0xff]  }
  0x22   :  { %v2350_v31 = vld [vmem:[#allocation2 + $0x1e4] ss:$16 sps:$4 sm:$0xff]   ;;  %v2724_v34 = vld [vmem:[%s2919_s0] ss:$24 sps:$4 sm:$0xff]  }
  0x23   :  { %v2358_v33 = vld [vmem:[#allocation2 + $0x204] ss:$16 sps:$4 sm:$0xff]   ;;  %v2356_v35 = vld [vmem:[#allocation2 + $0x200] ss:$16 sps:$4 sm:$0xff]  }
  0x24   :  { %1254 = vmatpush1.bf16.msra.mxu0 %v2319_v9  ;;  %v2729_v36 = vld [vmem:[%s2919_s0 + $0xc] ss:$24 sps:$4 sm:$0xff]   ;;  %v2359_v38 = vld [vmem:[#allocation2 + $0x220] ss:$16 sps:$4 sm:$0xff]  }
  0x25   :  { %1255 = vmatprep.subr.bf16.mxu0 %v2320_v10  ;;  %v2361_v37 = vld [vmem:[#allocation2 + $0x224] ss:$16 sps:$4 sm:$0xff]   ;;  %v2362_v41 = vld [vmem:[#allocation2 + $0x240] ss:$16 sps:$4 sm:$0xff]  }
  0x26   :  { %v2364_v39 = vld [vmem:[#allocation2 + $0x244] ss:$16 sps:$4 sm:$0xff]   ;;  %v2365_v46 = vld [vmem:[#allocation2 + $0x260] ss:$16 sps:$4 sm:$0xff]  }
  0x27   :  { %v2367_v43 = vld [vmem:[#allocation2 + $0x264] ss:$16 sps:$4 sm:$0xff]   ;;  %v2368_v48 = vld [vmem:[#allocation2 + $0x280] ss:$16 sps:$4 sm:$0xff]  }
  0x28   :  { %1256 = vmatpush1.bf16.msra.mxu0 %v2322_v11  ;;  %v2370_v47 = vld [vmem:[#allocation2 + $0x284] ss:$16 sps:$4 sm:$0xff]   ;;  %v2371_v50 = vld [vmem:[#allocation2 + $0x2a0] ss:$16 sps:$4 sm:$0xff]  }
  0x29   :  { %1257 = vmatprep.subr.bf16.mxu0 %v2323_v12  ;;  %v2373_v49 = vld [vmem:[#allocation2 + $0x2a4] ss:$16 sps:$4 sm:$0xff]   ;;  %v2374_v52 = vld [vmem:[#allocation2 + $0x2c0] ss:$16 sps:$4 sm:$0xff]  }
  0x2a   :  { %v2376_v51 = vld [vmem:[#allocation2 + $0x2c4] ss:$16 sps:$4 sm:$0xff]   ;;  %v2377_v54 = vld [vmem:[#allocation2 + $0x2e0] ss:$16 sps:$4 sm:$0xff]  }
  0x2b   :  { %v2379_v53 = vld [vmem:[#allocation2 + $0x2e4] ss:$16 sps:$4 sm:$0xff]   ;;  %v2380_v56 = vld [vmem:[#allocation2 + $0x300] ss:$16 sps:$4 sm:$0xff]  }
  0x2c   :  { %1258 = vmatpush1.bf16.msra.mxu0 %v2325_v14  ;;  %v2382_v55 = vld [vmem:[#allocation2 + $0x304] ss:$16 sps:$4 sm:$0xff]   ;;  %v2383_v58 = vld [vmem:[#allocation2 + $0x320] ss:$16 sps:$4 sm:$0xff]  }
  0x2d   :  { %1259 = vmatprep.subr.bf16.mxu0 %v2326_v15  ;;  %v2385_v57 = vld [vmem:[#allocation2 + $0x324] ss:$16 sps:$4 sm:$0xff]   ;;  %v2386_v60 = vld [vmem:[#allocation2 + $0x340] ss:$16 sps:$4 sm:$0xff]  }
  0x2e   :  { %v2388_v59 = vld [vmem:[#allocation2 + $0x344] ss:$16 sps:$4 sm:$0xff]   ;;  %v2389_v62 = vld [vmem:[#allocation2 + $0x360] ss:$16 sps:$4 sm:$0xff]  }
  0x2f   :  { %v2391_v61 = vld [vmem:[#allocation2 + $0x364] ss:$16 sps:$4 sm:$0xff]   ;;  %v2392_v0 = vld [vmem:[#allocation2 + $0x380] ss:$16 sps:$4 sm:$0xff]  }
  0x30   :  { %1260 = vmatpush1.bf16.msra.mxu0 %v2328_v16  ;;  %v2394_v63 = vld [vmem:[#allocation2 + $0x384] ss:$16 sps:$4 sm:$0xff]   ;;  %v2395_v2 = vld [vmem:[#allocation2 + $0x3a0] ss:$16 sps:$4 sm:$0xff]  }
  0x31   :  { %1261 = vmatprep.subr.bf16.mxu0 %v2329_v17  ;;  %v2397_v1 = vld [vmem:[#allocation2 + $0x3a4] ss:$16 sps:$4 sm:$0xff]   ;;  %v2398_v4 = vld [vmem:[#allocation2 + $0x3c0] ss:$16 sps:$4 sm:$0xff]  }
  0x32   :  { %v2400_v3 = vld [vmem:[#allocation2 + $0x3c4] ss:$16 sps:$4 sm:$0xff]   ;;  %v2401_v6 = vld [vmem:[#allocation2 + $0x3e0] ss:$16 sps:$4 sm:$0xff]  }
  0x33   :  { %v2403_v5 = vld [vmem:[#allocation2 + $0x3e4] ss:$16 sps:$4 sm:$0xff]   ;;  %v2736_v8 = vld [vmem:[%s2919_s0 + $0x8] ss:$24 sps:$4 sm:$0xff]  }
  0x34   :  { %1262 = vmatpush1.bf16.msra.mxu0 %v2331_v18  ;;  %v2409_v7 = vld [vmem:[#allocation2 + $0x404] ss:$16 sps:$4 sm:$0xff]   ;;  %v2407_v9 = vld [vmem:[#allocation2 + $0x400] ss:$16 sps:$4 sm:$0xff]  }
  0x35   :  { %1263 = vmatprep.subr.bf16.mxu0 %v2332_v19  ;;  %v2741_v10 = vld [vmem:[%s2919_s0 + $0x14] ss:$24 sps:$4 sm:$0xff]   ;;  %v2410_v12 = vld [vmem:[#allocation2 + $0x420] ss:$16 sps:$4 sm:$0xff]  }
  0x36   :  { %v2412_v11 = vld [vmem:[#allocation2 + $0x424] ss:$16 sps:$4 sm:$0xff]   ;;  %v2413_v14 = vld [vmem:[#allocation2 + $0x440] ss:$16 sps:$4 sm:$0xff]  }
  0x37   :  { %v2415_v13 = vld [vmem:[#allocation2 + $0x444] ss:$16 sps:$4 sm:$0xff]   ;;  %v2416_v16 = vld [vmem:[#allocation2 + $0x460] ss:$16 sps:$4 sm:$0xff]  }
  0x38   :  { %1264 = vmatpush1.bf16.msra.mxu0 %v2334_v20  ;;  %v2418_v15 = vld [vmem:[#allocation2 + $0x464] ss:$16 sps:$4 sm:$0xff]   ;;  %v2419_v18 = vld [vmem:[#allocation2 + $0x480] ss:$16 sps:$4 sm:$0xff]  }
  0x39   :  { %1265 = vmatprep.subr.bf16.mxu0 %v2335_v21  ;;  %v2421_v17 = vld [vmem:[#allocation2 + $0x484] ss:$16 sps:$4 sm:$0xff]   ;;  %v2422_v20 = vld [vmem:[#allocation2 + $0x4a0] ss:$16 sps:$4 sm:$0xff]  }
  0x3a   :  { %v2424_v19 = vld [vmem:[#allocation2 + $0x4a4] ss:$16 sps:$4 sm:$0xff]   ;;  %v2449_v40 = vld [vmem:[#allocation2 + $0x5c0] ss:$16 sps:$4 sm:$0xff]  }
  0x3b   :  { %v2427_v21 = vld [vmem:[#allocation2 + $0x4c4] ss:$16 sps:$4 sm:$0xff]   ;;  %v2452_v42 = vld [vmem:[#allocation2 + $0x5e0] ss:$16 sps:$4 sm:$0xff]  }
  0x3c   :  { %1266 = vmatpush1.bf16.msra.mxu0 %v2337_v22  ;;  %v2425_v22 = vld [vmem:[#allocation2 + $0x4c0] ss:$16 sps:$4 sm:$0xff]  }
  0x3d   :  { %1267 = vmatprep.subr.bf16.mxu0 %v2338_v23  ;;  %v2430_v23 = vld [vmem:[#allocation2 + $0x4e4] ss:$16 sps:$4 sm:$0xff]  }
  0x40   :  { %1268 = vmatpush1.bf16.msra.mxu0 %v2340_v24  ;;  %v2428_v24 = vld [vmem:[#allocation2 + $0x4e0] ss:$16 sps:$4 sm:$0xff]  }
  0x41   :  { %1269 = vmatprep.subr.bf16.mxu0 %v2341_v25  ;;  %v2433_v25 = vld [vmem:[#allocation2 + $0x504] ss:$16 sps:$4 sm:$0xff]  }
  0x44   :  { %1270 = vmatpush1.bf16.msra.mxu0 %v2343_v26  ;;  %v2431_v26 = vld [vmem:[#allocation2 + $0x500] ss:$16 sps:$4 sm:$0xff]  }
  0x45   :  { %1271 = vmatprep.subr.bf16.mxu0 %v2344_v27  ;;  %v2436_v27 = vld [vmem:[#allocation2 + $0x524] ss:$16 sps:$4 sm:$0xff]  }
  0x48   :  { %1272 = vmatpush1.bf16.msra.mxu0 %v2346_v28  ;;  %v2434_v28 = vld [vmem:[#allocation2 + $0x520] ss:$16 sps:$4 sm:$0xff]  }
  0x49   :  { %1273 = vmatprep.subr.bf16.mxu0 %v2347_v29  ;;  %v2439_v29 = vld [vmem:[#allocation2 + $0x544] ss:$16 sps:$4 sm:$0xff]  }
  0x4c   :  { %1274 = vmatpush1.bf16.msra.mxu0 %v2349_v30  ;;  %v2437_v30 = vld [vmem:[#allocation2 + $0x540] ss:$16 sps:$4 sm:$0xff]  }
  0x4d   :  { %1275 = vmatprep.subr.bf16.mxu0 %v2350_v31  ;;  %v2442_v31 = vld [vmem:[#allocation2 + $0x564] ss:$16 sps:$4 sm:$0xff]  }
  0x50   :  { %1276 = vmatpush1.bf16.msra.mxu0 %v2352_v32  ;;  %v2440_v32 = vld [vmem:[#allocation2 + $0x560] ss:$16 sps:$4 sm:$0xff]  }
  0x51   :  { %1288 = vmatprep.subr.bf16.mxu0 %v2358_v33  ;;  %v2445_v33 = vld [vmem:[#allocation2 + $0x584] ss:$16 sps:$4 sm:$0xff]  }
  0x53   :  { %1278 = vmatmul.mubr.bf16.vlgmr.msra.gmra.mrb[0].mxu0 %v2724_v34 }
  0x54   :  { %1289 = vmatpush1.bf16.msra.mxu0 %v2356_v35  ;;  %1320 = vmatprep.mubr.bf16.mxu0 %v2729_v36  ;;  %v2443_v35 = vld [vmem:[#allocation2 + $0x580] ss:$16 sps:$4 sm:$0xff]  }
  0x55   :  { %1290 = vmatprep.subr.bf16.mxu0 %v2361_v37  ;;  %v2448_v37 = vld [vmem:[#allocation2 + $0x5a4] ss:$16 sps:$4 sm:$0xff]  }
  0x58   :  { %1291 = vmatpush1.bf16.msra.mxu0 %v2359_v38  ;;  %v2446_v38 = vld [vmem:[#allocation2 + $0x5a0] ss:$16 sps:$4 sm:$0xff]  }
  0x59   :  { %1292 = vmatprep.subr.bf16.mxu0 %v2364_v39  ;;  %v2451_v39 = vld [vmem:[#allocation2 + $0x5c4] ss:$16 sps:$4 sm:$0xff]  }
  0x5c   :  { %1293 = vmatpush1.bf16.msra.mxu0 %v2362_v41  ;;  %v2454_v41 = vld [vmem:[#allocation2 + $0x5e4] ss:$16 sps:$4 sm:$0xff]  }
  0x5d   :  { %1294 = vmatprep.subr.bf16.mxu0 %v2367_v43  ;;  %v2748_v43 = vld [vmem:[%s2919_s0 + $0x10] ss:$24 sps:$4 sm:$0xff]  }
  0x60   :  { %1295 = vmatpush1.bf16.msra.mxu0 %v2365_v46  ;;  %v2467_v46 = vld [vmem:[#allocation2 + $0x6c] ss:$16 sps:$4 sm:$0xff]  }
  0x61   :  { %1296 = vmatprep.subr.bf16.mxu0 %v2370_v47  ;;  %v2469_v47 = vld [vmem:[#allocation2 + $0x68] ss:$16 sps:$4 sm:$0xff]   ;;  %1380 = vmatprep.subr.bf16.mxu1 %v2467_v46 }
  0x62   :  { %1381 = vmatpush1.bf16.msra.mxu1 %v2469_v47  ;;  %v2554_v46 = vld [vmem:[#allocation2 + $0x408] ss:$16 sps:$4 sm:$0xff]   ;;  %v2559_v47 = vld [vmem:[#allocation2 + $0x42c] ss:$16 sps:$4 sm:$0xff]  }
  0x64   :  { %1297 = vmatpush1.bf16.msra.mxu0 %v2368_v48  ;;  %v2470_v48 = vld [vmem:[#allocation2 + $0x8c] ss:$16 sps:$4 sm:$0xff]  }
  0x65   :  { %1298 = vmatprep.subr.bf16.mxu0 %v2373_v49  ;;  %1382 = vmatprep.subr.bf16.mxu1 %v2470_v48  ;;  %v2472_v49 = vld [vmem:[#allocation2 + $0x88] ss:$16 sps:$4 sm:$0xff]  }
  0x66   :  { %1383 = vmatpush1.bf16.msra.mxu1 %v2472_v49  ;;  %v2760_v49 = vld [vmem:[%s2921_s2] sm:$0xf] }
  0x68   :  { %1299 = vmatpush1.bf16.msra.mxu0 %v2371_v50  ;;  %v2473_v50 = vld [vmem:[#allocation2 + $0xac] ss:$16 sps:$4 sm:$0xff]  }
  0x69   :  { %1300 = vmatprep.subr.bf16.mxu0 %v2376_v51  ;;  %v2475_v51 = vld [vmem:[#allocation2 + $0xa8] ss:$16 sps:$4 sm:$0xff]   ;;  %1384 = vmatprep.subr.bf16.mxu1 %v2473_v50 }
  0x6a   :  { %1385 = vmatpush1.bf16.msra.mxu1 %v2475_v51  ;;  %v2557_v50 = vld [vmem:[#allocation2 + $0x428] ss:$16 sps:$4 sm:$0xff]   ;;  %v2562_v51 = vld [vmem:[#allocation2 + $0x44c] ss:$16 sps:$4 sm:$0xff]  }
  0x6c   :  { %1301 = vmatpush1.bf16.msra.mxu0 %v2374_v52  ;;  %v2476_v52 = vld [vmem:[#allocation2 + $0xcc] ss:$16 sps:$4 sm:$0xff]  }
  0x6d   :  { %1302 = vmatprep.subr.bf16.mxu0 %v2379_v53  ;;  %v2478_v53 = vld [vmem:[#allocation2 + $0xc8] ss:$16 sps:$4 sm:$0xff]   ;;  %1386 = vmatprep.subr.bf16.mxu1 %v2476_v52 }
  0x6e   :  { %1387 = vmatpush1.bf16.msra.mxu1 %v2478_v53  ;;  %v2560_v53 = vld [vmem:[#allocation2 + $0x448] ss:$16 sps:$4 sm:$0xff]  }
  0x70   :  { %1303 = vmatpush1.bf16.msra.mxu0 %v2377_v54  ;;  %v2479_v54 = vld [vmem:[#allocation2 + $0xec] ss:$16 sps:$4 sm:$0xff]  }
  0x71   :  { %1304 = vmatprep.subr.bf16.mxu0 %v2382_v55  ;;  %v2481_v55 = vld [vmem:[#allocation2 + $0xe8] ss:$16 sps:$4 sm:$0xff]   ;;  %1388 = vmatprep.subr.bf16.mxu1 %v2479_v54  ;;  %v2565_v54 = vld [vmem:[#allocation2 + $0x46c] ss:$16 sps:$4 sm:$0xff]  }
  0x72   :  { %1389 = vmatpush1.bf16.msra.mxu1 %v2481_v55 }
  0x74   :  { %1305 = vmatpush1.bf16.msra.mxu0 %v2380_v56  ;;  %v2482_v56 = vld [vmem:[#allocation2 + $0x10c] ss:$16 sps:$4 sm:$0xff]  }
  0x75   :  { %1306 = vmatprep.subr.bf16.mxu0 %v2385_v57  ;;  %v2484_v57 = vld [vmem:[#allocation2 + $0x108] ss:$16 sps:$4 sm:$0xff]   ;;  %1390 = vmatprep.subr.bf16.mxu1 %v2482_v56 }
  0x76   :  { %1391 = vmatpush1.bf16.msra.mxu1 %v2484_v57 }
  0x78   :  { %1307 = vmatpush1.bf16.msra.mxu0 %v2383_v58  ;;  %v2485_v58 = vld [vmem:[#allocation2 + $0x12c] ss:$16 sps:$4 sm:$0xff]  }
  0x79   :  { %1308 = vmatprep.subr.bf16.mxu0 %v2388_v59  ;;  %v2487_v59 = vld [vmem:[#allocation2 + $0x128] ss:$16 sps:$4 sm:$0xff]   ;;  %1392 = vmatprep.subr.bf16.mxu1 %v2485_v58 }
  0x7a   :  { %1393 = vmatpush1.bf16.msra.mxu1 %v2487_v59  ;;  %v2563_v58 = vld [vmem:[#allocation2 + $0x468] ss:$16 sps:$4 sm:$0xff]  }
  0x7c   :  { %1309 = vmatpush1.bf16.msra.mxu0 %v2386_v60  ;;  %v2488_v60 = vld [vmem:[#allocation2 + $0x14c] ss:$16 sps:$4 sm:$0xff]  }
  0x7d   :  { %1310 = vmatprep.subr.bf16.mxu0 %v2391_v61  ;;  %v2490_v61 = vld [vmem:[#allocation2 + $0x148] ss:$16 sps:$4 sm:$0xff]   ;;  %1394 = vmatprep.subr.bf16.mxu1 %v2488_v60 }
  0x7e   :  { %1395 = vmatpush1.bf16.msra.mxu1 %v2490_v61  ;;  %v2568_v61 = vld [vmem:[#allocation2 + $0x48c] ss:$16 sps:$4 sm:$0xff]  }
  0x80   :  { %1311 = vmatpush1.bf16.msra.mxu0 %v2389_v62  ;;  %v2491_v62 = vld [vmem:[#allocation2 + $0x16c] ss:$16 sps:$4 sm:$0xff]  }
  0x81   :  { %1312 = vmatprep.subr.bf16.mxu0 %v2394_v63  ;;  %v2493_v63 = vld [vmem:[#allocation2 + $0x168] ss:$16 sps:$4 sm:$0xff]   ;;  %1396 = vmatprep.subr.bf16.mxu1 %v2491_v62 }
  0x82   :  { %1397 = vmatpush1.bf16.msra.mxu1 %v2493_v63  ;;  %v2566_v62 = vld [vmem:[#allocation2 + $0x488] ss:$16 sps:$4 sm:$0xff]  }
  0x84   :  { %1313 = vmatpush1.bf16.msra.mxu0 %v2392_v0  ;;  %v2494_v0 = vld [vmem:[#allocation2 + $0x18c] ss:$16 sps:$4 sm:$0xff]  }
  0x85   :  { %1314 = vmatprep.subr.bf16.mxu0 %v2397_v1  ;;  %v2496_v1 = vld [vmem:[#allocation2 + $0x188] ss:$16 sps:$4 sm:$0xff]   ;;  %1398 = vmatprep.subr.bf16.mxu1 %v2494_v0  ;;  %v2571_v0 = vld [vmem:[#allocation2 + $0x4ac] ss:$16 sps:$4 sm:$0xff]  }
  0x86   :  { %1399 = vmatpush1.bf16.msra.mxu1 %v2496_v1  ;;  %v2569_v1 = vld [vmem:[#allocation2 + $0x4a8] ss:$16 sps:$4 sm:$0xff]  }
  0x88   :  { %1315 = vmatpush1.bf16.msra.mxu0 %v2395_v2  ;;  %v2497_v2 = vld [vmem:[#allocation2 + $0x1ac] ss:$16 sps:$4 sm:$0xff]  }
  0x89   :  { %1316 = vmatprep.subr.bf16.mxu0 %v2400_v3  ;;  %v2499_v3 = vld [vmem:[#allocation2 + $0x1a8] ss:$16 sps:$4 sm:$0xff]   ;;  %1400 = vmatprep.subr.bf16.mxu1 %v2497_v2  ;;  %v2574_v2 = vld [vmem:[#allocation2 + $0x4cc] ss:$16 sps:$4 sm:$0xff]  }
  0x8a   :  { %1401 = vmatpush1.bf16.msra.mxu1 %v2499_v3  ;;  %v2572_v3 = vld [vmem:[#allocation2 + $0x4c8] ss:$16 sps:$4 sm:$0xff]  }
  0x8c   :  { %1317 = vmatpush1.bf16.msra.mxu0 %v2398_v4  ;;  %v2500_v4 = vld [vmem:[#allocation2 + $0x1cc] ss:$16 sps:$4 sm:$0xff]  }
  0x8d   :  { %1318 = vmatprep.subr.bf16.mxu0 %v2403_v5  ;;  %v2502_v5 = vld [vmem:[#allocation2 + $0x1c8] ss:$16 sps:$4 sm:$0xff]   ;;  %1402 = vmatprep.subr.bf16.mxu1 %v2500_v4  ;;  %v2577_v4 = vld [vmem:[#allocation2 + $0x4ec] ss:$16 sps:$4 sm:$0xff]  }
  0x8e   :  { %1403 = vmatpush1.bf16.msra.mxu1 %v2502_v5  ;;  %v2575_v5 = vld [vmem:[#allocation2 + $0x4e8] ss:$16 sps:$4 sm:$0xff]  }
  0x90   :  { %1319 = vmatpush1.bf16.msra.mxu0 %v2401_v6  ;;  %v2503_v6 = vld [vmem:[#allocation2 + $0x1ec] ss:$16 sps:$4 sm:$0xff]  }
  0x91   :  { %1331 = vmatprep.subr.bf16.mxu0 %v2409_v7  ;;  %v2505_v7 = vld [vmem:[#allocation2 + $0x1e8] ss:$16 sps:$4 sm:$0xff]   ;;  %1404 = vmatprep.subr.bf16.mxu1 %v2503_v6  ;;  %v2580_v6 = vld [vmem:[#allocation2 + $0x50c] ss:$16 sps:$4 sm:$0xff]  }
  0x92   :  { %1405 = vmatpush1.bf16.msra.mxu1 %v2505_v7  ;;  %v2578_v7 = vld [vmem:[#allocation2 + $0x508] ss:$16 sps:$4 sm:$0xff]  }
  0x93   :  { %1321 = vmatmul.mubr.bf16.vlgmr.msra.gmra.mrb[0].mxu0 %v2736_v8 }
  0x94   :  { %1332 = vmatpush1.bf16.msra.mxu0 %v2407_v9  ;;  %1363 = vmatprep.mubr.bf16.mxu0 %v2741_v10  ;;  %v2508_v9 = vld [vmem:[#allocation2 + $0x20c] ss:$16 sps:$4 sm:$0xff]  }
  0x95   :  { %1333 = vmatprep.subr.bf16.mxu0 %v2412_v11  ;;  %v2506_v11 = vld [vmem:[#allocation2 + $0x208] ss:$16 sps:$4 sm:$0xff]   ;;  %1417 = vmatprep.subr.bf16.mxu1 %v2508_v9 }
  0x96   :  { %1407 = vmatmul.mubr.bf16.vlgmr.msra.gmra.mrb[0].mxu1 %v2724_v34  ;;  %v2521_v34 = vld [vmem:[#allocation2 + $0x2a8] ss:$16 sps:$4 sm:$0xff]  }
  0x97   :  { %1418 = vmatpush1.bf16.msra.mxu1 %v2506_v11  ;;  %1449 = vmatprep.mubr.bf16.mxu1 %v2729_v36  ;;  %v2524_v36 = vld [vmem:[#allocation2 + $0x2c8] ss:$16 sps:$4 sm:$0xff]   ;;  %v2583_v11 = vld [vmem:[#allocation2 + $0x52c] ss:$16 sps:$4 sm:$0xff]  }
  0x98   :  { %1334 = vmatpush1.bf16.msra.mxu0 %v2410_v12  ;;  %v2511_v12 = vld [vmem:[#allocation2 + $0x22c] ss:$16 sps:$4 sm:$0xff]   ;;  %v2581_v9 = vld [vmem:[#allocation2 + $0x528] ss:$16 sps:$4 sm:$0xff]  }
  0x99   :  { %1335 = vmatprep.subr.bf16.mxu0 %v2415_v13  ;;  %v2509_v13 = vld [vmem:[#allocation2 + $0x228] ss:$16 sps:$4 sm:$0xff]   ;;  %1419 = vmatprep.subr.bf16.mxu1 %v2511_v12  ;;  %v2586_v12 = vld [vmem:[#allocation2 + $0x54c] ss:$16 sps:$4 sm:$0xff]  }
  0x9b   :  { %1420 = vmatpush1.bf16.msra.mxu1 %v2509_v13  ;;  %v2584_v13 = vld [vmem:[#allocation2 + $0x548] ss:$16 sps:$4 sm:$0xff]  }
  0x9c   :  { %1336 = vmatpush1.bf16.msra.mxu0 %v2413_v14  ;;  %v2514_v14 = vld [vmem:[#allocation2 + $0x24c] ss:$16 sps:$4 sm:$0xff]  }
  0x9d   :  { %1337 = vmatprep.subr.bf16.mxu0 %v2418_v15  ;;  %v2512_v15 = vld [vmem:[#allocation2 + $0x248] ss:$16 sps:$4 sm:$0xff]   ;;  %1421 = vmatprep.subr.bf16.mxu1 %v2514_v14 }
  0x9e   :  { %v2587_v14 = vld [vmem:[#allocation2 + $0x568] ss:$16 sps:$4 sm:$0xff]  }
  0x9f   :  { %1422 = vmatpush1.bf16.msra.mxu1 %v2512_v15  ;;  %v2589_v15 = vld [vmem:[#allocation2 + $0x56c] ss:$16 sps:$4 sm:$0xff]  }
  0xa0   :  { %1338 = vmatpush1.bf16.msra.mxu0 %v2416_v16  ;;  %v2517_v16 = vld [vmem:[#allocation2 + $0x26c] ss:$16 sps:$4 sm:$0xff]  }
  0xa1   :  { %1339 = vmatprep.subr.bf16.mxu0 %v2421_v17  ;;  %v2515_v17 = vld [vmem:[#allocation2 + $0x268] ss:$16 sps:$4 sm:$0xff]   ;;  %1423 = vmatprep.subr.bf16.mxu1 %v2517_v16 }
  0xa2   :  { %v2590_v16 = vld [vmem:[#allocation2 + $0x588] ss:$16 sps:$4 sm:$0xff]  }
  0xa3   :  { %1424 = vmatpush1.bf16.msra.mxu1 %v2515_v17  ;;  %v2592_v17 = vld [vmem:[#allocation2 + $0x58c] ss:$16 sps:$4 sm:$0xff]  }
  0xa4   :  { %1340 = vmatpush1.bf16.msra.mxu0 %v2419_v18  ;;  %v2520_v18 = vld [vmem:[#allocation2 + $0x28c] ss:$16 sps:$4 sm:$0xff]  }
  0xa5   :  { %1341 = vmatprep.subr.bf16.mxu0 %v2424_v19  ;;  %v2518_v19 = vld [vmem:[#allocation2 + $0x288] ss:$16 sps:$4 sm:$0xff]   ;;  %1425 = vmatprep.subr.bf16.mxu1 %v2520_v18  ;;  %v2595_v18 = vld [vmem:[#allocation2 + $0x5ac] ss:$16 sps:$4 sm:$0xff]  }
  0xa7   :  { %1426 = vmatpush1.bf16.msra.mxu1 %v2518_v19  ;;  %v2593_v19 = vld [vmem:[#allocation2 + $0x5a8] ss:$16 sps:$4 sm:$0xff]  }
  0xa8   :  { %1342 = vmatpush1.bf16.msra.mxu0 %v2422_v20  ;;  %v2523_v20 = vld [vmem:[#allocation2 + $0x2ac] ss:$16 sps:$4 sm:$0xff]  }
  0xa9   :  { %1343 = vmatprep.subr.bf16.mxu0 %v2427_v21  ;;  %1427 = vmatprep.subr.bf16.mxu1 %v2523_v20  ;;  %v2526_v21 = vld [vmem:[#allocation2 + $0x2cc] ss:$16 sps:$4 sm:$0xff]  }
  0xaa   :  { %v2598_v20 = vld [vmem:[#allocation2 + $0x5cc] ss:$16 sps:$4 sm:$0xff]  }
  0xab   :  { %1428 = vmatpush1.bf16.msra.mxu1 %v2521_v34  ;;  %v2596_v34 = vld [vmem:[#allocation2 + $0x5c8] ss:$16 sps:$4 sm:$0xff]  }
  0xac   :  { %1344 = vmatpush1.bf16.msra.mxu0 %v2425_v22  ;;  %1429 = vmatprep.subr.bf16.mxu1 %v2526_v21  ;;  %v2529_v22 = vld [vmem:[#allocation2 + $0x2ec] ss:$16 sps:$4 sm:$0xff]  }
  0xad   :  { %1345 = vmatprep.subr.bf16.mxu0 %v2430_v23  ;;  %v2527_v23 = vld [vmem:[#allocation2 + $0x2e8] ss:$16 sps:$4 sm:$0xff]   ;;  %v2601_v21 = vld [vmem:[#allocation2 + $0x5ec] ss:$16 sps:$4 sm:$0xff]  }
  0xaf   :  { %1430 = vmatpush1.bf16.msra.mxu1 %v2524_v36  ;;  %v2599_v36 = vld [vmem:[#allocation2 + $0x5e8] ss:$16 sps:$4 sm:$0xff]  }
  0xb0   :  { %1346 = vmatpush1.bf16.msra.mxu0 %v2428_v24  ;;  %1431 = vmatprep.subr.bf16.mxu1 %v2529_v22  ;;  %v2532_v24 = vld [vmem:[#allocation2 + $0x30c] ss:$16 sps:$4 sm:$0xff]  }
  0xb1   :  { %1347 = vmatprep.subr.bf16.mxu0 %v2433_v25  ;;  %v2530_v25 = vld [vmem:[#allocation2 + $0x308] ss:$16 sps:$4 sm:$0xff]  }
  0xb3   :  { %1432 = vmatpush1.bf16.msra.mxu1 %v2527_v23 }
  0xb4   :  { %1348 = vmatpush1.bf16.msra.mxu0 %v2431_v26  ;;  %1433 = vmatprep.subr.bf16.mxu1 %v2532_v24  ;;  %v2535_v26 = vld [vmem:[#allocation2 + $0x32c] ss:$16 sps:$4 sm:$0xff]  }
  0xb5   :  { %1349 = vmatprep.subr.bf16.mxu0 %v2436_v27  ;;  %v2533_v27 = vld [vmem:[#allocation2 + $0x328] ss:$16 sps:$4 sm:$0xff]  }
  0xb7   :  { %1434 = vmatpush1.bf16.msra.mxu1 %v2530_v25 }
  0xb8   :  { %1350 = vmatpush1.bf16.msra.mxu0 %v2434_v28  ;;  %1435 = vmatprep.subr.bf16.mxu1 %v2535_v26  ;;  %v2538_v28 = vld [vmem:[#allocation2 + $0x34c] ss:$16 sps:$4 sm:$0xff]  }
  0xb9   :  { %1351 = vmatprep.subr.bf16.mxu0 %v2439_v29  ;;  %v2536_v29 = vld [vmem:[#allocation2 + $0x348] ss:$16 sps:$4 sm:$0xff]  }
  0xbb   :  { %1436 = vmatpush1.bf16.msra.mxu1 %v2533_v27 }
  0xbc   :  { %1352 = vmatpush1.bf16.msra.mxu0 %v2437_v30  ;;  %1437 = vmatprep.subr.bf16.mxu1 %v2538_v28  ;;  %v2541_v30 = vld [vmem:[#allocation2 + $0x36c] ss:$16 sps:$4 sm:$0xff]  }
  0xbd   :  { %1353 = vmatprep.subr.bf16.mxu0 %v2442_v31  ;;  %v2539_v31 = vld [vmem:[#allocation2 + $0x368] ss:$16 sps:$4 sm:$0xff]  }
  0xbf   :  { %1438 = vmatpush1.bf16.msra.mxu1 %v2536_v29 }
  0xc0   :  { %1354 = vmatpush1.bf16.msra.mxu0 %v2440_v32  ;;  %1439 = vmatprep.subr.bf16.mxu1 %v2541_v30  ;;  %v2544_v32 = vld [vmem:[#allocation2 + $0x38c] ss:$16 sps:$4 sm:$0xff]  }
  0xc1   :  { %1355 = vmatprep.subr.bf16.mxu0 %v2445_v33  ;;  %v2542_v33 = vld [vmem:[#allocation2 + $0x388] ss:$16 sps:$4 sm:$0xff]  }
  0xc3   :  { %1440 = vmatpush1.bf16.msra.mxu1 %v2539_v31 }
  0xc4   :  { %1356 = vmatpush1.bf16.msra.mxu0 %v2443_v35  ;;  %1441 = vmatprep.subr.bf16.mxu1 %v2544_v32  ;;  %v2547_v35 = vld [vmem:[#allocation2 + $0x3ac] ss:$16 sps:$4 sm:$0xff]  }
  0xc5   :  { %1357 = vmatprep.subr.bf16.mxu0 %v2448_v37  ;;  %v2545_v37 = vld [vmem:[#allocation2 + $0x3a8] ss:$16 sps:$4 sm:$0xff]   ;;  %v2607_v32 = vld [vmem:[%s2922_s3 + $0xc] ss:$16 sps:$4 sm:$0xff]  }
  0xc7   :  { %1442 = vmatpush1.bf16.msra.mxu1 %v2542_v33  ;;  %v2602_v33 = vld [vmem:[%s2922_s3] ss:$16 sps:$4 sm:$0xff]  }
  0xc8   :  { %1358 = vmatpush1.bf16.msra.mxu0 %v2446_v38  ;;  %1443 = vmatprep.subr.bf16.mxu1 %v2547_v35  ;;  %v2550_v38 = vld [vmem:[#allocation2 + $0x3cc] ss:$16 sps:$4 sm:$0xff]   ;;  %v2605_v35 = vld [vmem:[%s2922_s3 + $0x8] ss:$16 sps:$4 sm:$0xff]  }
  0xc9   :  { %1359 = vmatprep.subr.bf16.mxu0 %v2451_v39  ;;  %v2548_v39 = vld [vmem:[#allocation2 + $0x3c8] ss:$16 sps:$4 sm:$0xff]  }
  0xcb   :  { %1444 = vmatpush1.bf16.msra.mxu1 %v2545_v37  ;;  %v2675_v37 = vmov 0  }
  0xcc   :  { %1360 = vmatpush1.bf16.msra.mxu0 %v2449_v40  ;;  %1445 = vmatprep.subr.bf16.mxu1 %v2550_v38  ;;  %v2553_v40 = vld [vmem:[#allocation2 + $0x3ec] ss:$16 sps:$4 sm:$0xff]   ;;  %v2608_v38 = vld [vmem:[%s2923_s4 + $0x40] sm:$0xff]  }
  0xcd   :  { %1361 = vmatprep.subr.bf16.mxu0 %v2454_v41  ;;  %v235_v41 = vlaneseq }
  0xcf   :  { %1446 = vmatpush1.bf16.msra.mxu1 %v2548_v39  ;;  %v2753_v45 = vshrl.u32 %v235_v41, 7  ;;  %v2609_v39 = vld [vmem:[%s2923_s4 + $0xc0] sm:$0xff]  }
  0xd0   :  { %1362 = vmatpush1.bf16.msra.mxu0 %v2452_v42  ;;  %v2551_v42 = vld [vmem:[#allocation2 + $0x3e8] ss:$16 sps:$4 sm:$0xff]   ;;  %1447 = vmatprep.subr.bf16.mxu1 %v2553_v40 }
  0xd1   :  { %v237_v48 = vsub.s32 0, %v2753_v45 }
  0xd3   :  { %1364 = vmatmul.mubr.bf16.vlgmr.msra.gmra.mrb[0].mxu0 %v2748_v43  ;;  %1448 = vmatpush1.bf16.msra.mxu1 %v2551_v42  ;;  %v238_v52 = vrot.slane %v2760_v49, %v237_v48 }
  0xd4   :  { %1460 = vmatprep.subr.bf16.mxu1 %v2556_v44  ;;  %1586 = vmatprep.mubr.bf16.mxu0 %v2675_v37 }
  0xd6   :  { %1450 = vmatmul.mubr.bf16.vlgmr.msra.gmra.mrb[0].mxu1 %v2736_v8 }
  0xd7   :  { %1461 = vmatpush1.bf16.msra.mxu1 %v2554_v46  ;;  %1492 = vmatprep.mubr.bf16.mxu1 %v2741_v10 }
  0xd8   :  { %1462 = vmatprep.subr.bf16.mxu1 %v2559_v47 }
  0xdb   :  { %1463 = vmatpush1.bf16.msra.mxu1 %v2557_v50 }
  0xdc   :  { %1464 = vmatprep.subr.bf16.mxu1 %v2562_v51 }
  0xdf   :  { %1465 = vmatpush1.bf16.msra.mxu1 %v2560_v53  ;;  %v2610_v53 = vld [vmem:[%s2923_s4] sm:$0xff]  }
  0xe0   :  { %1466 = vmatprep.subr.bf16.mxu1 %v2565_v54  ;;  %v2611_v54 = vld [vmem:[%s2923_s4 + $0x80] sm:$0xff]  }
  0xe3   :  { %1467 = vmatpush1.bf16.msra.mxu1 %v2563_v58  ;;  %v2613_v58 = vld [vmem:[%s2923_s4 + $0xc8] sm:$0xff]  }
  0xe4   :  { %1468 = vmatprep.subr.bf16.mxu1 %v2568_v61  ;;  %v2615_v61 = vld [vmem:[%s2923_s4 + $0x88] sm:$0xff]  }
  0xe7   :  { %1469 = vmatpush1.bf16.msra.mxu1 %v2566_v62  ;;  %v2616_v62 = vld [vmem:[%s2923_s4 + $0x50] sm:$0xff]  }
  0xe8   :  { %1470 = vmatprep.subr.bf16.mxu1 %v2571_v0  ;;  %v2618_v0 = vld [vmem:[%s2923_s4 + $0x10] sm:$0xff]  }
  0xeb   :  { %1471 = vmatpush1.bf16.msra.mxu1 %v2569_v1  ;;  %v2619_v1 = vld [vmem:[%s2923_s4 + $0x90] sm:$0xff]  }
  0xec   :  { %1472 = vmatprep.subr.bf16.mxu1 %v2574_v2  ;;  %v2620_v2 = vld [vmem:[%s2923_s4 + $0x58] sm:$0xff]  }
  0xef   :  { %1473 = vmatpush1.bf16.msra.mxu1 %v2572_v3  ;;  %v2621_v3 = vld [vmem:[%s2923_s4 + $0xd8] sm:$0xff]  }
  0xf0   :  { %1474 = vmatprep.subr.bf16.mxu1 %v2577_v4  ;;  %v2622_v4 = vld [vmem:[%s2923_s4 + $0x18] sm:$0xff]  }
  0xf3   :  { %1475 = vmatpush1.bf16.msra.mxu1 %v2575_v5  ;;  %v2623_v5 = vld [vmem:[%s2923_s4 + $0x98] sm:$0xff]  }
  0xf4   :  { %1476 = vmatprep.subr.bf16.mxu1 %v2580_v6  ;;  %v2624_v6 = vld [vmem:[%s2923_s4 + $0x60] sm:$0xff]  }
  0xf7   :  { %1477 = vmatpush1.bf16.msra.mxu1 %v2578_v7  ;;  %v2625_v7 = vld [vmem:[%s2923_s4 + $0xe0] sm:$0xff]  }
  0xf8   :  { %1478 = vmatprep.subr.bf16.mxu1 %v2583_v11  ;;  %v2627_v11 = vld [vmem:[%s2923_s4 + $0xa0] sm:$0xff]  }
  0xfb   :  { %1479 = vmatpush1.bf16.msra.mxu1 %v2581_v9  ;;  %v2626_v9 = vld [vmem:[%s2923_s4 + $0x20] sm:$0xff]  }
  0xfc   :  { %1480 = vmatprep.subr.bf16.mxu1 %v2586_v12  ;;  %v2628_v12 = vld [vmem:[%s2923_s4 + $0x68] sm:$0xff]  }
  0xff   :  { %1481 = vmatpush1.bf16.msra.mxu1 %v2584_v13  ;;  %v2629_v13 = vld [vmem:[%s2923_s4 + $0xe8] sm:$0xff]  }
 0x100   :  { %1482 = vmatprep.subr.bf16.mxu1 %v2589_v15  ;;  %v2631_v15 = vld [vmem:[%s2923_s4 + $0xa8] sm:$0xff]  }
 0x103   :  { %1483 = vmatpush1.bf16.msra.mxu1 %v2587_v14  ;;  %v2630_v14 = vld [vmem:[%s2923_s4 + $0x28] sm:$0xff]  }
 0x104   :  { %1484 = vmatprep.subr.bf16.mxu1 %v2592_v17  ;;  %v2633_v17 = vld [vmem:[%s2923_s4 + $0xf0] sm:$0xff]  }
 0x107   :  { %1485 = vmatpush1.bf16.msra.mxu1 %v2590_v16  ;;  %v2632_v16 = vld [vmem:[%s2923_s4 + $0x70] sm:$0xff]  }
 0x108   :  { %1486 = vmatprep.subr.bf16.mxu1 %v2595_v18  ;;  %v2634_v18 = vld [vmem:[%s2923_s4 + $0x30] sm:$0xff]  }
 0x10b   :  { %1487 = vmatpush1.bf16.msra.mxu1 %v2593_v19  ;;  %v2635_v19 = vld [vmem:[%s2923_s4 + $0xb0] sm:$0xff]  }
 0x10c   :  { %1488 = vmatprep.subr.bf16.mxu1 %v2598_v20  ;;  %v2636_v20 = vld [vmem:[%s2923_s4 + $0x78] sm:$0xff]  }
 0x10f   :  { %1489 = vmatpush1.bf16.msra.mxu1 %v2596_v34  ;;  %v2637_v34 = vld [vmem:[%s2923_s4 + $0xf8] sm:$0xff]  }
 0x110   :  { %1490 = vmatprep.subr.bf16.mxu1 %v2601_v21  ;;  %v2638_v21 = vld [vmem:[%s2923_s4 + $0x38] sm:$0xff]  }
 0x113   :  { %1491 = vmatpush1.bf16.msra.mxu1 %v2599_v36  ;;  %v2639_v36 = vld [vmem:[%s2923_s4 + $0xb8] sm:$0xff]  }
 0x114   :  { %1597 = vmatprep.subr.bf16.mxu1 %v2607_v32 }
 0x116   :  { %1493 = vmatmul.mubr.bf16.vlgmr.msra.gmra.mrb[0].mxu1 %v2748_v43  ;;  %v2604_v43 = vld [vmem:[%s2922_s3 + $0x4] ss:$16 sps:$4 sm:$0xff]  }
 0x117   :  { %1554 = vmatprep.subr.bf16.mxu0 %v2604_v43  ;;  %1598 = vmatpush1.bf16.msra.mxu1 %v2605_v35 }
 0x118   :  { %1555 = vmatpush1.bf16.msra.mxu0 %v2602_v33  ;;  %1629 = vmatprep.mubr.bf16.mxu1 %v2675_v37 }
 0x119   :  { %2233 = vmatprep.subr.bf16.mxu0 %v2608_v38  ;;  %2255 = vmatprep.subr.bf16.mxu1 %v2609_v39 }
 0x1a6   :  { %v1365_v55 = vpop.f32.mrb[0].mxu0 }
 0x1a7   :  { %v2764_v8 = vadd.f32 %v1365_v55, %v238_v52  ;;  %v2766_v56 = vpop.f32.mrb[1].mxu0 }
 0x1a8   :  { %v1369_v57 = vpop.f32.mrb[2].mxu0 }
 0x1a9   :  { %v2768_v59 = vadd.f32 %v1369_v57, %v238_v52  ;;  %v2770_v10 = vpop.f32.mrb[3].mxu0  ;;  %v1504_v60 = vsel %vm1503_vm0, %v2764_v8, -inf  ;;  %v2612_v57 = vld [vmem:[%s2923_s4 + $0x48] sm:$0xff]  }
 0x1aa   :  { %1505 = vmax.xlane.f32.xlu0 %v1504_v60  ;;  %v2614_v60 = vld [vmem:[%s2923_s4 + $0x8] sm:$0xff]  }
 0x1ab   :  { %v1507_v63 = vsel %vm1503_vm0, %v2768_v59, -inf }
 0x1ae   :  { %1508 = vmax.xlane.f32.xlu0 %v1507_v63  ;;  %v2617_v63 = vld [vmem:[%s2923_s4 + $0xd0] sm:$0xff]  }
 0x1e9   :  { %v2799_v40 = vpop.f32.mrb[0].mxu1 }
 0x1ea   :  { %v2801_v41 = vpop.f32.mrb[1].mxu1 }
 0x1eb   :  { %v2803_v42 = vpop.f32.mrb[2].mxu1 }
 0x1ec   :  { %v2805_v44 = vpop.f32.mrb[3].mxu1 }
 0x237   :  { %v1506_v22 = vpop.xlane.xlu0 %1505 }
 0x238   :  { %v1510_v23 = vsub.f32 %v2764_v8, %v1506_v22  ;;  %v245_v22 = vsub.s32 2, %v2753_v45 }
 0x23a   :  { %v1512_v24 = vmul.f32 1.442695, %v1510_v23  ;;  %v241_v23 = vsub.s32 1, %v2753_v45 }
 0x23b   :  { %v1509_v25 = vpop.xlane.xlu0 %1508 }
 0x23c   :  { %2640 = vpow2.f32 %v1512_v24  ;;  %v1511_v26 = vsub.f32 %v2768_v59, %v1509_v25  ;;  %v249_v24 = vsub.s32 3, %v2753_v45  ;;  %v246_v25 = vrot.slane %v2760_v49, %v245_v22 }
 0x23e   :  { %v1514_v27 = vmul.f32 1.442695, %v1511_v26  ;;  %v242_v26 = vrot.slane %v2760_v49, %v241_v23  ;;  %v2283_v32 = vadd.f32 %v2803_v42, %v246_v25 }
 0x240   :  { %2642 = vpow2.f32 %v1514_v27  ;;  %v250_v27 = vrot.slane %v2760_v49, %v249_v24  ;;  %v2280_v45 = vadd.f32 %v2770_v10, %v242_v26 }
 0x242   :  { %v2284_v38 = vadd.f32 %v2805_v44, %v250_v27 }
 0x246   :  { %v2641_v28 = vpop.eup %2640 }
 0x247   :  { %v1516_v29 = vsel %vm1503_vm0, %v2641_v28, 0.0 }
 0x248   :  { %1517 = vadd.xlane.f32.xlu1 %v1516_v29  ;;  %v2278_v29 = vadd.f32 %v2766_v56, %v242_v26 }
 0x24a   :  { %v2643_v30 = vpop.eup %2642 }
 0x24b   :  { %v1519_v31 = vsel %vm1503_vm0, %v2643_v30, 0.0 }
 0x24c   :  { %1520 = vadd.xlane.f32.xlu1 %v1519_v31 }
 0x2d5   :  { %v1518_v46 = vpop.xlane.xlu1 %1517 }
 0x2d6   :  { %2644 = vrcp.f32 %v1518_v46 }
 0x2d9   :  { %v1521_v47 = vpop.xlane.xlu1 %1520 }
 0x2da   :  { %2646 = vrcp.f32 %v1521_v47 }
 0x2e0   :  { %v2645_v48 = vpop.eup %2644 }
 0x2e1   :  { %v1524_v51 = vmul.f32 %v2645_v48, %v2641_v28  ;;  %v2281_v28 = vadd.f32 %v2799_v40, %v246_v25 }
 0x2e4   :  { %v2647_v50 = vpop.eup %2646 }
 0x2e5   :  { %v1525_v52 = vmul.f32 %v2647_v50, %v2643_v30  ;;  %v2282_v30 = vadd.f32 %v2801_v41, %v250_v27 }
 0x2e7   :  { %v1526_v55 = vpack.c.bf16 %v1525_v52, %v1524_v51 }
 0x2e9   :  { %2199 = vmatmul.mubr.msk.bf16.vlgmr.msra.gmra.mrb[4].mxu0 %vm1503_vm0, %v1526_v55  ;;  %2200 = vmatmul.mubr.msk.bf16.vlgmr.msra.gmra.mrb[4].mxu1 %vm1503_vm0, %v1526_v55 }
 0x2ea   :  { %2234 = vmatpush3.bf16.msra.mxu0 %v2610_v53  ;;  %2256 = vmatpush3.bf16.msra.mxu1 %v2611_v54 }
 0x2eb   :  { %2235 = vmatprep.subr.bf16.mxu0 %v2612_v57  ;;  %2257 = vmatprep.subr.bf16.mxu1 %v2613_v58 }
 0x2ee   :  { %2236 = vmatpush3.bf16.msra.mxu0 %v2614_v60  ;;  %2258 = vmatpush3.bf16.msra.mxu1 %v2615_v61 }
 0x2ef   :  { %2237 = vmatprep.subr.bf16.mxu0 %v2616_v62  ;;  %2259 = vmatprep.subr.bf16.mxu1 %v2617_v63 }
 0x2f2   :  { %2238 = vmatpush3.bf16.msra.mxu0 %v2618_v0  ;;  %2260 = vmatpush3.bf16.msra.mxu1 %v2619_v1 }
 0x2f3   :  { %2239 = vmatprep.subr.bf16.mxu0 %v2620_v2  ;;  %2261 = vmatprep.subr.bf16.mxu1 %v2621_v3 }
 0x2f6   :  { %2240 = vmatpush3.bf16.msra.mxu0 %v2622_v4  ;;  %2262 = vmatpush3.bf16.msra.mxu1 %v2623_v5 }
 0x2f7   :  { %2241 = vmatprep.subr.bf16.mxu0 %v2624_v6  ;;  %2263 = vmatprep.subr.bf16.mxu1 %v2625_v7 }
 0x2fa   :  { %2242 = vmatpush3.bf16.msra.mxu0 %v2626_v9  ;;  %2264 = vmatpush3.bf16.msra.mxu1 %v2627_v11 }
 0x2fb   :  { %2243 = vmatprep.subr.bf16.mxu0 %v2628_v12  ;;  %2265 = vmatprep.subr.bf16.mxu1 %v2629_v13 }
 0x2fe   :  { %2244 = vmatpush3.bf16.msra.mxu0 %v2630_v14  ;;  %2266 = vmatpush3.bf16.msra.mxu1 %v2631_v15 }
 0x2ff   :  { %2245 = vmatprep.subr.bf16.mxu0 %v2632_v16  ;;  %2267 = vmatprep.subr.bf16.mxu1 %v2633_v17 }
 0x302   :  { %2246 = vmatpush3.bf16.msra.mxu0 %v2634_v18  ;;  %2268 = vmatpush3.bf16.msra.mxu1 %v2635_v19 }
 0x303   :  { %2247 = vmatprep.subr.bf16.mxu0 %v2636_v20  ;;  %2269 = vmatprep.subr.bf16.mxu1 %v2637_v34 }
 0x306   :  { %2248 = vmatpush3.bf16.msra.mxu0 %v2638_v21  ;;  %2270 = vmatpush3.bf16.msra.mxu1 %v2639_v36 }
 0x3bc   :  { %v1588_v31 = vpop.f32.mrb[4].mxu0  ;;  %v1631_v43 = vpop.f32.mrb[4].mxu1 }
 0x3bd   :  { %v1642_v33 = vmul.f32 %v2281_v28, %v1631_v43  ;;  %v1590_v35 = vpop.f32.mrb[5].mxu0  ;;  %v1633_v37 = vpop.f32.mrb[5].mxu1  ;;  %v1640_v40 = vmul.f32 %v2764_v8, %v1588_v31 }
 0x3be   :  { %v1641_v39 = vmul.f32 %v2278_v29, %v1590_v35  ;;  %v1643_v46 = vmul.f32 %v2282_v30, %v1633_v37  ;;  %v1592_v49 = vpop.f32.mrb[6].mxu0  ;;  %v1635_v47 = vpop.f32.mrb[6].mxu1 }
 0x3bf   :  { %v1644_v56 = vmul.f32 %v2768_v59, %v1592_v49  ;;  %v1646_v41 = vmul.f32 %v2283_v32, %v1635_v47  ;;  %v1594_v48 = vpop.f32.mrb[7].mxu0  ;;  %v1637_v50 = vpop.f32.mrb[7].mxu1 }
 0x3c0   :  { %v1645_v51 = vmul.f32 %v2280_v45, %v1594_v48  ;;  %v1647_v42 = vmul.f32 %v2284_v38, %v1637_v50 }
 0x3c1   :  { %v1648_v52 = vpack.c.bf16 %v1644_v56, %v1640_v40  ;;  %v1650_v53 = vpack.c.bf16 %v1646_v41, %v1642_v33 }
 0x3c2   :  { %v1649_v54 = vpack.c.bf16 %v1645_v51, %v1641_v39  ;;  %v1651_v55 = vpack.c.bf16 %v1647_v42, %v1643_v46 }
 0x3c4   :  { %1940 = vmatprep.mubr.bf16.mxu0 %v1649_v54  ;;  %1981 = vmatprep.mubr.bf16.mxu1 %v1651_v55 }
 0x3c5   :  { %1941 = vmatmul.mubr.bf16.vlgmr.msra.gmra.mrb[8].mxu0 %v1648_v52  ;;  %1982 = vmatmul.mubr.bf16.vlgmr.msra.gmra.mrb[8].mxu1 %v1650_v53 }
 0x498   :  { %v2249_v10 = vpop.f32.mrb[8].mxu0  ;;  %v2271_v44 = vpop.f32.mrb[8].mxu1 }
 0x499   :  { %v2250_v57 = vpop.f32.mrb[9].mxu0  ;;  %v2272_v58 = vpop.f32.mrb[9].mxu1 }
 0x49a   :  { %v2251_v8 = vadd.f32 %v2250_v57, %v2249_v10  ;;  %v2273_v60 = vadd.f32 %v2272_v58, %v2271_v44  ;;  %v2252_v59 = vpop.f32.mrb[10].mxu0  ;;  %v2274_v61 = vpop.f32.mrb[10].mxu1 }
 0x49b   :  { %v2253_v62 = vpop.f32.mrb[11].mxu0  ;;  %v2275_v63 = vpop.f32.mrb[11].mxu1 }
 0x49c   :  { %v1984_v0 = vadd.f32 %v2273_v60, %v2251_v8  ;;  %v2254_v1 = vadd.f32 %v2253_v62, %v2252_v59  ;;  %v2276_v2 = vadd.f32 %v2275_v63, %v2274_v61 }
 0x49e   :  { %1990 = vst [vmem:[%s2924_s5] sm:$0xff] %v1984_v0  ;;  %v1987_v3 = vadd.f32 %v2276_v2, %v2254_v1 }
 0x4a0   :  { %1991 = vst [vmem:[%s2924_s5 + $0x8] sm:$0xff] %v1987_v3 }
 0x4a1   :  { %1996 = vsyncpa [#allocation3], 1 }

</bundles_post_ra>
